<compile_context>
chip_gen: v7x
topology: tpu7x:2x2x1
jax: 0.10.0
libtpu: 0.0.40
codegen_flags: <defaults>
</compile_context>

<pallas_src>
import functools

import jax
import jax.numpy as jnp
from jax import lax
from jax.experimental import pallas as pl
from jax.experimental.pallas import tpu as pltpu
import numpy as np


def _round_up(x, m):
    return (x + m - 1) // m * m


def _hloss_kernel(x_ref, o_ref, acc_ref, *,
                  inv_temp, n_valid_rows, tile_rows, padded_rows, inv_denom):
    """Accumulates sum(-softmax(x/T) * log(softmax(x/T) + 1e-6)) over row tiles.

    x_ref   : [tile_rows, C]   input logits tile (any float dtype)
    o_ref   : [1, 1] f32 SMEM  final scalar loss (written on last grid step)
    acc_ref : [1, 1] f32 SMEM  running sum across grid steps
    """
    step = pl.program_id(0)

    @pl.when(step == 0)
    def _init():
        acc_ref[0, 0] = jnp.float32(0.0)

    # Softmax along the class (last) axis, computed in f32.
    x = x_ref[...].astype(jnp.float32) * inv_temp              # [tile_rows, C]
    row_max = jnp.max(x, axis=1, keepdims=True)
    ex = jnp.exp(x - row_max)
    z = jnp.sum(ex, axis=1, keepdims=True)
    p = ex * pl.reciprocal(z)                                   # exact reciprocal
    ent = -p * jnp.log(p + 1e-6)                                # elementwise entropy

    # Mask rows that are only padding (static check: only emit mask if needed).
    if n_valid_rows != padded_rows:
        row_ids = step * tile_rows + lax.broadcasted_iota(
            jnp.int32, (tile_rows, 1), 0)
        ent = jnp.where(row_ids < n_valid_rows, ent, 0.0)

    acc_ref[0, 0] += jnp.sum(ent)

    @pl.when(step == pl.num_programs(0) - 1)
    def _finalize():
        o_ref[0, 0] = acc_ref[0, 0] * inv_denom


def hloss(x, temp_factor=1.0, *, tile_rows=256):
    """JAX / Pallas equivalent of HLoss.forward (entropy of softmax, mean)."""
    x = jnp.asarray(x)
    if x.ndim < 2:
        raise ValueError("HLoss expects input with at least 2 dims [batch, classes, ...]")

    # softmax is over dim=1: move the class dim last, flatten everything else
    # into independent rows (equivalent because softmax(dim=1) is per-fiber and
    # the final mean is permutation invariant).
    if x.ndim > 2:
        perm = (0,) + tuple(range(2, x.ndim)) + (1,)
        x2 = jnp.transpose(x, perm).reshape(-1, x.shape[1])
    else:
        x2 = x
    n_rows, n_cols = x2.shape

    # Tile over rows; tile height multiple of 8 (sublane), class dim stays full.
    tile_rows = int(min(tile_rows, _round_up(n_rows, 8)))
    padded_rows = _round_up(n_rows, tile_rows)
    if padded_rows != n_rows:
        x2 = jnp.pad(x2, ((0, padded_rows - n_rows), (0, 0)))
    num_tiles = padded_rows // tile_rows

    kernel = functools.partial(
        _hloss_kernel,
        inv_temp=float(1.0 / float(temp_factor)),
        n_valid_rows=int(n_rows),
        tile_rows=int(tile_rows),
        padded_rows=int(padded_rows),
        inv_denom=float(1.0 / float(n_rows * n_cols)),
    )

    out = pl.pallas_call(
        kernel,
        out_shape=jax.ShapeDtypeStruct((1, 1), jnp.float32),
        grid=(num_tiles,),
        in_specs=[
            pl.BlockSpec((tile_rows, n_cols), lambda i: (i, 0),
                         memory_space=pltpu.MemorySpace.VMEM),
        ],
        out_specs=pl.BlockSpec((1, 1), lambda i: (0, 0),
                               memory_space=pltpu.MemorySpace.SMEM),
        scratch_shapes=[pltpu.SMEM((1, 1), jnp.float32)],
        compiler_params=pltpu.CompilerParams(
            dimension_semantics=("arbitrary",),      # reduction axis into scalar
            vmem_limit_bytes=32 * 1024 * 1024,       # safe on v5e/v6e/v7x
        ),
        cost_estimate=pl.CostEstimate(
            flops=int(6 * n_rows * n_cols),
            transcendentals=int(2 * n_rows * n_cols),   # exp + log per element
            bytes_accessed=int(n_rows * n_cols * x.dtype.itemsize + 4),
        ),
    )(x2)
    return out[0, 0]


def hloss_ref(x, temp_factor=1.0):
    """Pure-jnp reference mirroring the PyTorch HLoss.forward (for validation)."""
    sm = jax.nn.softmax(jnp.asarray(x, jnp.float32) / temp_factor, axis=1)
    ent = -sm * jnp.log(sm + 1e-6)
    return ent.mean()


if __name__ == "__main__":
    key = jax.random.PRNGKey(0)
    k1, k2 = jax.random.split(key)

    # Case 1: plain 2-D logits, batch=16, classes=64, temp_factor=1.0
    x2d = jax.random.normal(k1, (16, 64), dtype=jnp.float32) * 3.0
    loss2d = jax.block_until_ready(hloss(x2d, temp_factor=1.0))
    ref2d = hloss_ref(x2d, temp_factor=1.0)
    np.testing.assert_allclose(np.asarray(loss2d), np.asarray(ref2d),
                               rtol=1e-5, atol=1e-6)

    # Case 2: 4-D map [batch=2, classes=10, 8, 8], softmax over dim=1, temp=0.5
    x4d = jax.random.normal(k2, (2, 10, 8, 8), dtype=jnp.float32) * 2.0
    loss4d = jax.block_until_ready(hloss(x4d, temp_factor=0.5))
    ref4d = hloss_ref(x4d, temp_factor=0.5)
    np.testing.assert_allclose(np.asarray(loss4d), np.asarray(ref4d),
                               rtol=1e-5, atol=1e-6)

    # Case 3: row count not a multiple of the tile (exercises padding mask).
    x_odd = jax.random.normal(key, (13, 37), dtype=jnp.float32)
    loss_odd = jax.block_until_ready(hloss(x_odd, temp_factor=2.0, tile_rows=8))
    ref_odd = hloss_ref(x_odd, temp_factor=2.0)
    np.testing.assert_allclose(np.asarray(loss_odd), np.asarray(ref_odd),
                               rtol=1e-5, atol=1e-6)

    print("KERNEL_OK")
</pallas_src>

<mosaic_0001>
module attributes {stable_mosaic.version = 11 : i64} {
  func.func @_hloss_kernel(%arg0: i32, %arg1: memref<16x64xf32, #tpu.memory_space<vmem>>, %arg2: memref<1x1xf32, #tpu.memory_space<smem>>, %arg3: memref<1x1xf32, #tpu.memory_space<smem>>) attributes {dimension_semantics = [#tpu.dimension_semantics<arbitrary>], iteration_bounds = array<i64: 1>, scalar_prefetch = 0 : i64, scratch_operands = 1 : i64, tpu.core_type = #tpu.core_type<tc>, window_params = [{transform_indices = @transform_0, window_bounds = array<i64: 16, 64>}, {transform_indices = @transform_1, window_bounds = array<i64: 1, 1>}]} {
    %c0_i32 = arith.constant 0 : i32
    %0 = arith.cmpi eq, %arg0, %c0_i32 : i32
    %1 = arith.extui %0 : i1 to i32
    %c0_i32_0 = arith.constant 0 : i32
    %2 = arith.cmpi ne, %1, %c0_i32_0 : i32
    scf.if %2 {
      %cst_13 = arith.constant 0.000000e+00 : f32
      %c0_14 = arith.constant 0 : index
      %c0_15 = arith.constant 0 : index
      %32 = memref.load %arg3[%c0_14, %c0_15] : memref<1x1xf32, #tpu.memory_space<smem>>
      memref.store %cst_13, %arg3[%c0_14, %c0_15] : memref<1x1xf32, #tpu.memory_space<smem>>
    } else {
    }
    %c0 = arith.constant 0 : index
    %c0_1 = arith.constant 0 : index
    %3 = vector.load %arg1[%c0, %c0_1] : memref<16x64xf32, #tpu.memory_space<vmem>>, vector<16x64xf32>
    %cst = arith.constant 1.000000e+00 : f32
    %4 = vector.broadcast %cst : f32 to vector<16x64xf32>
    %5 = arith.mulf %3, %4 : vector<16x64xf32>
    %cst_2 = arith.constant dense<0xFF800000> : vector<16xf32>
    %6 = vector.multi_reduction <maximumf>, %5, %cst_2 [1] : vector<16x64xf32> to vector<16xf32>
    %7 = vector.shape_cast %6 : vector<16xf32> to vector<16x1xf32>
    %8 = vector.broadcast %7 : vector<16x1xf32> to vector<16x64xf32>
    %9 = arith.subf %5, %8 : vector<16x64xf32>
    %10 = math.exp %9 : vector<16x64xf32>
    %cst_3 = arith.constant dense<0.000000e+00> : vector<16xf32>
    %11 = vector.multi_reduction <add>, %10, %cst_3 [1] : vector<16x64xf32> to vector<16xf32>
    %12 = vector.shape_cast %11 : vector<16xf32> to vector<16x1xf32>
    %13 = tpu.reciprocal %12 : vector<16x1xf32> -> vector<16x1xf32>
    %14 = vector.broadcast %13 : vector<16x1xf32> to vector<16x64xf32>
    %15 = arith.mulf %10, %14 : vector<16x64xf32>
    %cst_4 = arith.constant 0.000000e+00 : f32
    %16 = vector.broadcast %cst_4 : f32 to vector<16x64xf32>
    %17 = arith.subf %16, %15 : vector<16x64xf32>
    %cst_5 = arith.constant 9.99999997E-7 : f32
    %18 = vector.broadcast %cst_5 : f32 to vector<16x64xf32>
    %19 = arith.addf %15, %18 : vector<16x64xf32>
    %20 = math.log %19 : vector<16x64xf32>
    %21 = arith.mulf %17, %20 : vector<16x64xf32>
    %c0_6 = arith.constant 0 : index
    %c0_7 = arith.constant 0 : index
    %22 = memref.load %arg3[%c0_6, %c0_7] : memref<1x1xf32, #tpu.memory_space<smem>>
    %23 = vector.shape_cast %21 : vector<16x64xf32> to vector<1x16x64xf32>
    %cst_8 = arith.constant dense<0.000000e+00> : vector<1xf32>
    %24 = vector.multi_reduction <add>, %23, %cst_8 [1, 2] : vector<1x16x64xf32> to vector<1xf32>
    %25 = vector.shape_cast %24 : vector<1xf32> to vector<1x1x1xf32>
    %26 = vector.extract %25[0, 0, 0] : f32 from vector<1x1x1xf32>
    %27 = arith.addf %22, %26 : f32
    %c0_9 = arith.constant 0 : index
    %c0_10 = arith.constant 0 : index
    %28 = memref.load %arg3[%c0_9, %c0_10] : memref<1x1xf32, #tpu.memory_space<smem>>
    memref.store %27, %arg3[%c0_9, %c0_10] : memref<1x1xf32, #tpu.memory_space<smem>>
    %c0_i32_11 = arith.constant 0 : i32
    %29 = arith.cmpi eq, %arg0, %c0_i32_11 : i32
    %30 = arith.extui %29 : i1 to i32
    %c0_i32_12 = arith.constant 0 : i32
    %31 = arith.cmpi ne, %30, %c0_i32_12 : i32
    scf.if %31 {
      %c0_13 = arith.constant 0 : index
      %c0_14 = arith.constant 0 : index
      %32 = memref.load %arg3[%c0_13, %c0_14] : memref<1x1xf32, #tpu.memory_space<smem>>
      %cst_15 = arith.constant 9.765625E-4 : f32
      %33 = arith.mulf %32, %cst_15 : f32
      %c0_16 = arith.constant 0 : index
      %c0_17 = arith.constant 0 : index
      %34 = memref.load %arg2[%c0_16, %c0_17] : memref<1x1xf32, #tpu.memory_space<smem>>
      memref.store %33, %arg2[%c0_16, %c0_17] : memref<1x1xf32, #tpu.memory_space<smem>>
    } else {
    }
    return
  }
  func.func @transform_0(%arg0: i32) -> (i32, i32) {
    %c0_i32 = arith.constant 0 : i32
    %c0_i32_0 = arith.constant 0 : i32
    return %arg0, %c0_i32 : i32, i32
  }
  func.func @transform_1(%arg0: i32) -> (i32, i32) {
    %c0_i32 = arith.constant 0 : i32
    %c0_i32_0 = arith.constant 0 : i32
    %c0_i32_1 = arith.constant 0 : i32
    return %c0_i32, %c0_i32_0 : i32, i32
  }
}

</mosaic_0001>

<bundles_post_ra>
// kernel: tpu_custom_call.1
= control target key start
LH: loop header
LB: loop body
LE: loop exit
PB: predicated region body
PF: predicated region fallthrough
CT: control target
= control target key end

     0   :  { %6 = vsyncpa [#allocation4], 0  ;;  %s199_s0 = inlined_call_operand.hbm [shape: f32[16,64], index: 0, kind: input, shape index: {}]   ;;  %s200_s1 = inlined_call_operand.hbm [shape: f32[1,1], index: 1, kind: output, shape index: {}]  }
   0x1   :  { %7 = vsyncpa [#allocation5], 0  ;;  %s155_s6 = smov [#allocation3]   ;;  %s119_s10 = scalar_lea.hbm %s199_s0, 256 }
   0x2   :  { %s13_s7 = sshll.u32 %s155_s6, 4  ;;  %p120_p0 = scmp.ne.s32.totalorder %s199_s0, %s119_s10  ;;  %s14_s7 = int_to_ptr.vmem [resolvable:$true] %s13_s7 }
   0x3   :  { %p123_p1 = scmp.lt.u32.totalorder %s119_s10, %s199_s0 }
   0x5   :  { %p125_p2 = pnand %p123_p1, %p120_p0 }
   0x7   :  { %128 = shalt.err (!%p125_p2)
}
   0x8   :  { %s129_s15 = scalar_lea.vmem %s14_s7, 256  ;;  %p134_p4 = scmp.lt.s32.totalorder %s14_s7, %s14_s7 }
   0x9   :  { %p130_p3 = scmp.ne.s32.totalorder %s14_s7, %s129_s15  ;;  %p135_p5 = scmp.lt.s32.totalorder %s129_s15, %s129_s15 }
   0xb   :  { %p136_p6 = por %p135_p5, %p134_p4 }
   0xd   :  { %p137_p7 = pnand %p136_p6, %p130_p3 }
   0xf   :  { %140 = shalt.err (!%p137_p7)
}
  0x10   :  { %s156_s16 = smov 128   ;;  %s157_s17 = smov 8  }
  0x11   :  { %19 = dma.hbm_to_vmem [thread:$0]  %s199_s0, 256, %s14_s7, [#allocation4], %s156_s16, %s156_s16, %s157_s17  }
  0x12   :  { %151 = dma.done.wait [#allocation4], 256  }
  0x13   :  { %152 = vsyncadd [#allocation4], 4294967040  ;;  %vm31_vm0 = vcmask 523264   ;;  %v29_v0 = vld [vmem:[#allocation3] sm:$0xff]  ;;  %v30_v1 = vld [vmem:[#allocation3 + $0x8] sm:$0xff]  ;;  %s141_s23 = scalar_lea.hbm %s200_s1, 16 }
  0x14   :  { %v32_v2 = vsel %vm31_vm0, %v29_v0, -inf  ;;  %v35_v3 = vsel %vm31_vm0, %v30_v1, -inf  ;;  %p142_p8 = scmp.ne.s32.totalorder %s200_s1, %s141_s23  ;;  %p145_p9 = scmp.lt.u32.totalorder %s141_s23, %s200_s1 }
  0x15   :  { %33 = vmax.xlane.f32.xlu0 %v32_v2 }
  0x16   :  { %p147_p10 = pnand %p145_p9, %p142_p8 }
  0x19   :  { %36 = vmax.xlane.f32.xlu0 %v35_v3 }
  0xa2   :  { %v34_v4 = vpop.xlane.xlu0 %33 }
  0xa3   :  { %v38_v5 = vsub.f32 %v29_v0, %v34_v4 }
  0xa5   :  { %v40_v6 = vmul.f32 1.442695, %v38_v5 }
  0xa6   :  { %v37_v7 = vpop.xlane.xlu0 %36 }
  0xa7   :  { %107 = vpow2.f32 %v40_v6  ;;  %v39_v8 = vsub.f32 %v30_v1, %v37_v7 }
  0xa9   :  { %v42_v9 = vmul.f32 1.442695, %v39_v8 }
  0xab   :  { %109 = vpow2.f32 %v42_v9 }
  0xb1   :  { %v108_v10 = vpop.eup %107 }
  0xb2   :  { %v44_v11 = vsel %vm31_vm0, %v108_v10, 0.0 }
  0xb3   :  { %45 = vadd.xlane.f32.xlu1 %v44_v11 }
  0xb5   :  { %v110_v12 = vpop.eup %109 }
  0xb6   :  { %v47_v13 = vsel %vm31_vm0, %v110_v12, 0.0 }
  0xb7   :  { %48 = vadd.xlane.f32.xlu1 %v47_v13 }
 0x140   :  { %v46_v14 = vpop.xlane.xlu1 %45 }
 0x141   :  { %111 = vrcp.f32 %v46_v14 }
 0x144   :  { %v49_v15 = vpop.xlane.xlu1 %48 }
 0x145   :  { %113 = vrcp.f32 %v49_v15 }
 0x14b   :  { %v112_v16 = vpop.eup %111 }
 0x14c   :  { %v52_v17 = vmul.f32 %v112_v16, %v108_v10 }
 0x14e   :  { %v56_v18 = vadd.f32 1e-06, %v52_v17  ;;  %v54_v24 = vsub.f32 0.0, %v52_v17 }
 0x14f   :  { %v114_v19 = vpop.eup %113 }
 0x150   :  { %v53_v20 = vmul.f32 %v114_v19, %v110_v12  ;;  %115 = vlog2.f32 %v56_v18 }
 0x152   :  { %v57_v21 = vadd.f32 1e-06, %v53_v20  ;;  %v55_v26 = vsub.f32 0.0, %v53_v20 }
 0x154   :  { %117 = vlog2.f32 %v57_v21 }
 0x15a   :  { %v116_v22 = vpop.eup %115 }
 0x15b   :  { %v59_v23 = vmul.f32 0.6931472, %v116_v22 }
 0x15d   :  { %v62_v28 = vmul.f32 %v59_v23, %v54_v24 }
 0x15e   :  { %v118_v25 = vpop.eup %117 }
 0x15f   :  { %v61_v27 = vmul.f32 0.6931472, %v118_v25  ;;  %v65_v30 = vsel %vm31_vm0, %v62_v28, 0.0 }
 0x161   :  { %v63_v29 = vmul.f32 %v61_v27, %v55_v26 }
 0x163   :  { %v66_v31 = vsel %vm31_vm0, %v63_v29, 0.0 }
 0x164   :  { %v67_v32 = vadd.f32 %v66_v31, %v65_v30 }
 0x166   :  { %68 = vadd.xlane.f32.xlu0 %v67_v32 }
 0x1f3   :  { %v69_v33 = vpop.xlane.xlu0 %68 }
 0x1f4   :  { %v70_v34 = vrot.slane %v69_v33, 4 }
 0x1f6   :  { %v71_v35 = vadd.f32 %v70_v34, %v69_v33 }
 0x1f8   :  { %v72_v36 = vrot.slane %v71_v35, 2 }
 0x1fa   :  { %v73_v37 = vadd.f32 %v72_v36, %v71_v35 }
 0x1fc   :  { %v74_v38 = vrot.slane %v73_v37, 1 }
 0x1fe   :  { %v75_v39 = vadd.f32 %v74_v38, %v73_v37 }
 0x200   :  { %101 = vpush %v75_v39 }
 0x231   :  { %s102_s0 = spop %101 }
 0x232   :  { %s84_s20 = smul.f32 0.0009765625, %s102_s0 }
 0x234   :  { %86 = sst [smem:[#allocation6]] %s84_s20 }
 0x235   :  { %150 = shalt.err (!%p147_p10)
}
 0x236   :  { %s158_s28 = smov [#allocation6]  }
 0x237   :  { %94 = dma.smem_to_hbm %s158_s28, 16, %s200_s1, [#allocation5]  }
 0x238   :  { %153 = dma.done.wait [#allocation5], 16  }
 0x239   :  { %154 = vsyncadd [#allocation5], 4294967280 }
 0x23a   :  { %98 = sfence }
 0x23b   :  { %99 = vsyncpa [#allocation4], 1 }
 0x23c   :  { %100 = vsyncpa [#allocation5], 1 }

</bundles_post_ra>
